<compile_context>
chip_gen: v5e
topology: v5e:2x2
jax: 0.10.0
libtpu: 0.0.40
codegen_flags: <defaults>
</compile_context>

<pallas_src>
import functools

import jax
import jax.numpy as jnp
from jax.experimental import pallas as pl
from jax.experimental.pallas import tpu as pltpu

_BN_EPS = 1e-5
_STASH_MAX_IN_FEATS = 128          # stash h instead of recomputing when in_feats <= this
_VMEM_LIMIT_BYTES = 48 * 1024 * 1024


def _round_up(x, m):
    return ((x + m - 1) // m) * m


def _mlp(x_ref, w1_ref, b1_ref, w2_ref, b2_ref, w3_ref, b3_ref, compute_dtype):
    """3 x (Linear -> ReLU). MXU operands in compute_dtype, f32 accumulation,
    bias-add / ReLU in f32 (v5e has no bf16 VPU)."""
    h = jnp.dot(x_ref[...].astype(compute_dtype), w1_ref[...],
                preferred_element_type=jnp.float32)
    h = jnp.maximum(h + b1_ref[...], 0.0)
    h = jnp.dot(h.astype(compute_dtype), w2_ref[...],
                preferred_element_type=jnp.float32)
    h = jnp.maximum(h + b2_ref[...], 0.0)
    h = jnp.dot(h.astype(compute_dtype), w3_ref[...],
                preferred_element_type=jnp.float32)
    h = jnp.maximum(h + b3_ref[...], 0.0)
    return h


def _partial_stats(h, *, tile_b, n_valid, need_mask):
    """Per-tile [1, 2, F] partial sum / sum-of-squares (padded rows masked)."""
    if need_mask:
        row = (jax.lax.broadcasted_iota(jnp.int32, h.shape, 0)
               + pl.program_id(0) * tile_b)
        h = jnp.where(row < n_valid, h, 0.0)
    s = jnp.sum(h, axis=0, keepdims=True)
    ss = jnp.sum(h * h, axis=0, keepdims=True)
    return jnp.concatenate([s, ss], axis=0)[None, :, :]


# ---- Pass-1 kernels -------------------------------------------------------
def _stats_stash_kernel(x_ref, w1_ref, b1_ref, w2_ref, b2_ref, w3_ref, b3_ref,
                        stats_ref, h_ref, *, tile_b, n_valid, need_mask,
                        compute_dtype):
    """Small-in_feats path: MLP + partial BN stats + stash h to HBM."""
    h = _mlp(x_ref, w1_ref, b1_ref, w2_ref, b2_ref, w3_ref, b3_ref, compute_dtype)
    stats_ref[...] = _partial_stats(h, tile_b=tile_b, n_valid=n_valid,
                                    need_mask=need_mask)
    h_ref[...] = h.astype(h_ref.dtype)


def _stats_kernel(x_ref, w1_ref, b1_ref, w2_ref, b2_ref, w3_ref, b3_ref,
                  stats_ref, *, tile_b, n_valid, need_mask, compute_dtype):
    """Large-in_feats path: MLP + partial BN stats only (h recomputed later)."""
    h = _mlp(x_ref, w1_ref, b1_ref, w2_ref, b2_ref, w3_ref, b3_ref, compute_dtype)
    stats_ref[...] = _partial_stats(h, tile_b=tile_b, n_valid=n_valid,
                                    need_mask=need_mask)


# ---- Pass-2 kernels -------------------------------------------------------
def _affine_kernel(h_ref, scale_ref, shift_ref, o_ref):
    """Small-in_feats path: pure scale/shift over the stashed activations."""
    h = h_ref[...].astype(jnp.float32)
    o_ref[...] = (h * scale_ref[...] + shift_ref[...]).astype(o_ref.dtype)


def _norm_kernel(x_ref, w1_ref, b1_ref, w2_ref, b2_ref, w3_ref, b3_ref,
                 scale_ref, shift_ref, o_ref, *, compute_dtype):
    """Large-in_feats path: recompute the MLP tile and apply the BN affine."""
    h = _mlp(x_ref, w1_ref, b1_ref, w2_ref, b2_ref, w3_ref, b3_ref, compute_dtype)
    o_ref[...] = (h * scale_ref[...] + shift_ref[...]).astype(o_ref.dtype)


def dapp_mlp(x, params, *, tile_b=4096, compute_dtype=jnp.bfloat16):
    """x: [N, in_feats] f32. params as produced by init_params()."""
    n, in_feats = x.shape
    out_feats = params["w3"].shape[1]
    f_pad = _round_up(max(out_feats, 128), 128)      # lane-dense feature width

    def pad2(a, rows, cols, fill=0.0):
        return jnp.pad(a, ((0, rows - a.shape[0]), (0, cols - a.shape[1])),
                       constant_values=fill)

    # Zero-pad weights/biases so intermediates occupy full 128-lane vregs.
    # Weights in compute_dtype (bf16 keeps the MXU in its native mode).
    w1 = pad2(params["w1"], in_feats, f_pad).astype(compute_dtype)
    b1 = pad2(params["b1"], 1, f_pad)
    w2 = pad2(params["w2"], f_pad, f_pad).astype(compute_dtype)
    b2 = pad2(params["b2"], 1, f_pad)
    w3 = pad2(params["w3"], f_pad, f_pad).astype(compute_dtype)
    b3 = pad2(params["b3"], 1, f_pad)
    gamma = pad2(params["gamma"], 1, f_pad, fill=1.0)   # gamma pad = 1 (not 0)
    beta = pad2(params["beta"], 1, f_pad)

    # Batch tiling: cap so a double-buffered x block stays <= ~8 MiB, then
    # force a multiple of 16 (satisfies the (8,128) rule for f32 and bf16).
    tile_b = min(tile_b, max(256, (8 * 1024 * 1024) // max(1, 4 * in_feats)))
    tile_b = max(16, _round_up(min(tile_b, n), 16))
    n_pad = _round_up(n, tile_b)
    num_tiles = n_pad // tile_b
    need_mask = n_pad != n

    x = x.astype(compute_dtype)          # halves the x HBM stream in bf16 mode
    if n_pad != n:
        x = jnp.pad(x, ((0, n_pad - n), (0, 0)))

    x_spec = pl.BlockSpec((tile_b, in_feats), lambda i: (i, 0))

    def const_spec(shape):
        # Constant block index -> DMA'd once, VMEM-resident across tiles.
        return pl.BlockSpec(shape, lambda i, _r=len(shape): (0,) * _r)

    param_args = (w1, b1, w2, b2, w3, b3)
    param_specs = [const_spec(a.shape) for a in param_args]
    param_bytes = sum(int(a.size) * a.dtype.itemsize for a in param_args)

    itemsize = jnp.dtype(compute_dtype).itemsize
    x_bytes = n_pad * in_feats * itemsize
    mlp_flops = 2 * n_pad * (in_feats * f_pad + 2 * f_pad * f_pad)
    stats_bytes = num_tiles * 2 * f_pad * 4
    out_bytes = n_pad * f_pad * 4

    cparams = pltpu.CompilerParams(
        dimension_semantics=("parallel",),   # megacore-safe: per-tile partials
        vmem_limit_bytes=_VMEM_LIMIT_BYTES,
    )

    stash_h = in_feats <= _STASH_MAX_IN_FEATS

    # ---- Pass 1: MLP + per-tile partial BatchNorm statistics ----
    if stash_h:
        stash_bytes = n_pad * f_pad * itemsize
        stats, h_stash = pl.pallas_call(
            functools.partial(_stats_stash_kernel, tile_b=tile_b, n_valid=n,
                              need_mask=need_mask, compute_dtype=compute_dtype),
            out_shape=(
                jax.ShapeDtypeStruct((num_tiles, 2, f_pad), jnp.float32),
                jax.ShapeDtypeStruct((n_pad, f_pad), compute_dtype),
            ),
            grid=(num_tiles,),
            in_specs=[x_spec] + param_specs,
            out_specs=(
                pl.BlockSpec((1, 2, f_pad), lambda i: (i, 0, 0)),
                pl.BlockSpec((tile_b, f_pad), lambda i: (i, 0)),
            ),
            compiler_params=cparams,
            cost_estimate=pl.CostEstimate(
                flops=mlp_flops, transcendentals=0,
                bytes_accessed=x_bytes + param_bytes + stash_bytes + stats_bytes),
        )(x, *param_args)
    else:
        stats = pl.pallas_call(
            functools.partial(_stats_kernel, tile_b=tile_b, n_valid=n,
                              need_mask=need_mask, compute_dtype=compute_dtype),
            out_shape=jax.ShapeDtypeStruct((num_tiles, 2, f_pad), jnp.float32),
            grid=(num_tiles,),
            in_specs=[x_spec] + param_specs,
            out_specs=pl.BlockSpec((1, 2, f_pad), lambda i: (i, 0, 0)),
            compiler_params=cparams,
            cost_estimate=pl.CostEstimate(
                flops=mlp_flops, transcendentals=0,
                bytes_accessed=x_bytes + param_bytes + stats_bytes),
        )(x, *param_args)

    # ---- Tiny JAX glue: global batch stats -> folded scale/shift ----
    sums = jnp.sum(stats[:, 0, :], axis=0)
    sumsq = jnp.sum(stats[:, 1, :], axis=0)
    mean = sums / n                                   # true batch size n
    var = jnp.maximum(sumsq / n - mean * mean, 0.0)   # biased (training mode)
    inv_std = jax.lax.rsqrt(var + _BN_EPS)
    scale = (gamma[0] * inv_std)[None, :]
    shift = (beta[0] - mean * gamma[0] * inv_std)[None, :]

    # ---- Pass 2: apply BN affine (from stash, or after a cheap recompute) ----
    if stash_h:
        out_pad = pl.pallas_call(
            _affine_kernel,
            out_shape=jax.ShapeDtypeStruct((n_pad, f_pad), jnp.float32),
            grid=(num_tiles,),
            in_specs=[pl.BlockSpec((tile_b, f_pad), lambda i: (i, 0)),
                      const_spec((1, f_pad)), const_spec((1, f_pad))],
            out_specs=pl.BlockSpec((tile_b, f_pad), lambda i: (i, 0)),
            compiler_params=cparams,
            cost_estimate=pl.CostEstimate(
                flops=2 * n_pad * f_pad, transcendentals=0,
                bytes_accessed=stash_bytes + out_bytes + 2 * f_pad * 4),
        )(h_stash, scale, shift)
    else:
        out_pad = pl.pallas_call(
            functools.partial(_norm_kernel, compute_dtype=compute_dtype),
            out_shape=jax.ShapeDtypeStruct((n_pad, f_pad), jnp.float32),
            grid=(num_tiles,),
            in_specs=[x_spec] + param_specs
            + [const_spec((1, f_pad)), const_spec((1, f_pad))],
            out_specs=pl.BlockSpec((tile_b, f_pad), lambda i: (i, 0)),
            compiler_params=cparams,
            cost_estimate=pl.CostEstimate(
                flops=mlp_flops + 2 * n_pad * f_pad, transcendentals=0,
                bytes_accessed=x_bytes + param_bytes + out_bytes + 2 * f_pad * 4),
        )(x, *param_args, scale, shift)

    # Dropout(p=0.0) is the identity. Slice off lane/row padding.
    return out_pad[:n, :out_feats]


def init_params(key, in_feats, out_feats=64, layer_nums=3):
    """Deterministic synthetic params (torch.nn.Linear-style uniform init).

    Weights are stored as [in_features, out_features] so the kernel computes
    x @ W directly.
    """
    assert layer_nums == 3
    params = {}
    fan_ins = [in_feats, out_feats, out_feats]
    for i, fin in enumerate(fan_ins, start=1):
        key, kw, kb = jax.random.split(key, 3)
        bound = 1.0 / jnp.sqrt(fin)
        params[f"w{i}"] = jax.random.uniform(
            kw, (fin, out_feats), jnp.float32, -bound, bound)
        params[f"b{i}"] = jax.random.uniform(
            kb, (1, out_feats), jnp.float32, -bound, bound)
    params["gamma"] = jnp.ones((1, out_feats), jnp.float32)   # BN weight
    params["beta"] = jnp.zeros((1, out_feats), jnp.float32)   # BN bias
    return params


def dapp_mlp_ref(x, params):
    """Pure-JAX reference (PyTorch training-mode BatchNorm: biased variance)."""
    h = x
    for i in (1, 2, 3):
        h = jnp.maximum(h @ params[f"w{i}"] + params[f"b{i}"], 0.0)
    mean = jnp.mean(h, axis=0, keepdims=True)
    var = jnp.mean((h - mean) ** 2, axis=0, keepdims=True)
    return (params["gamma"] * (h - mean) * jax.lax.rsqrt(var + _BN_EPS)
            + params["beta"])


if __name__ == "__main__":
    key = jax.random.PRNGKey(0)
    batch, in_feats, out_feats = 8, 32, 64

    key, kx = jax.random.split(key)
    x = jax.random.normal(kx, (batch, in_feats), jnp.float32)
    params = init_params(key, in_feats, out_feats)
    ref = dapp_mlp_ref(x, params)

    # Exact-semantics check: f32 MXU path (stash-h branch, in_feats <= 128).
    out_f32 = jax.block_until_ready(dapp_mlp(x, params, compute_dtype=jnp.float32))
    assert out_f32.shape == (batch, out_feats)
    assert jnp.allclose(out_f32, ref, atol=1e-4, rtol=1e-4), "mismatch (f32 path)"

    # Default fast path: bf16 MXU operands, f32 accumulation / BN stats.
    out_bf16 = jax.block_until_ready(dapp_mlp(x, params))
    assert out_bf16.shape == (batch, out_feats)
    assert jnp.allclose(out_bf16, ref, atol=1e-1, rtol=1e-1), "mismatch (bf16 path)"

    # Multi-tile ragged batch (padded rows masked out of BN stats).
    key, kx2 = jax.random.split(key)
    x2 = jax.random.normal(kx2, (20, in_feats), jnp.float32)
    out2 = jax.block_until_ready(
        dapp_mlp(x2, params, tile_b=16, compute_dtype=jnp.float32))
    ref2 = dapp_mlp_ref(x2, params)
    assert jnp.allclose(out2, ref2, atol=1e-4, rtol=1e-4), "mismatch (tiled path)"

    # Large-in_feats branch (recompute path, no h stash).
    key, kp3, kx3 = jax.random.split(key, 3)
    in3 = 256
    params3 = init_params(kp3, in3, out_feats)
    x3 = jax.random.normal(kx3, (24, in3), jnp.float32)
    out3 = jax.block_until_ready(dapp_mlp(x3, params3, compute_dtype=jnp.float32))
    ref3 = dapp_mlp_ref(x3, params3)
    assert jnp.allclose(out3, ref3, atol=1e-4, rtol=1e-4), "mismatch (recompute path)"

    print("KERNEL_OK")
</pallas_src>

<mosaic_0001>
module attributes {stable_mosaic.version = 11 : i64} {
  func.func @_stats_stash_kernel(%arg0: i32, %arg1: memref<16x32xf32, #tpu.memory_space<vmem>>, %arg2: memref<32x128xf32, #tpu.memory_space<vmem>>, %arg3: memref<1x128xf32, #tpu.memory_space<vmem>>, %arg4: memref<128x128xf32, #tpu.memory_space<vmem>>, %arg5: memref<1x128xf32, #tpu.memory_space<vmem>>, %arg6: memref<128x128xf32, #tpu.memory_space<vmem>>, %arg7: memref<1x128xf32, #tpu.memory_space<vmem>>, %arg8: memref<1x2x128xf32, #tpu.memory_space<vmem>>, %arg9: memref<16x128xf32, #tpu.memory_space<vmem>>) attributes {dimension_semantics = [#tpu.dimension_semantics<parallel>], iteration_bounds = array<i64: 1>, scalar_prefetch = 0 : i64, scratch_operands = 0 : i64, tpu.core_type = #tpu.core_type<tc>, window_params = [{transform_indices = @transform_0, window_bounds = array<i64: 16, 32>}, {pipeline_mode = #tpu.pipeline_mode<synchronous>, transform_indices = @transform_1, window_bounds = array<i64: 32, 128>}, {pipeline_mode = #tpu.pipeline_mode<synchronous>, transform_indices = @transform_2, window_bounds = array<i64: 1, 128>}, {pipeline_mode = #tpu.pipeline_mode<synchronous>, transform_indices = @transform_3, window_bounds = array<i64: 128, 128>}, {pipeline_mode = #tpu.pipeline_mode<synchronous>, transform_indices = @transform_4, window_bounds = array<i64: 1, 128>}, {pipeline_mode = #tpu.pipeline_mode<synchronous>, transform_indices = @transform_5, window_bounds = array<i64: 128, 128>}, {pipeline_mode = #tpu.pipeline_mode<synchronous>, transform_indices = @transform_6, window_bounds = array<i64: 1, 128>}, {transform_indices = @transform_7, window_bounds = array<i64: 1, 2, 128>}, {transform_indices = @transform_8, window_bounds = array<i64: 16, 128>}]} {
    %c0 = arith.constant 0 : index
    %c0_0 = arith.constant 0 : index
    %0 = vector.load %arg1[%c0, %c0_0] : memref<16x32xf32, #tpu.memory_space<vmem>>, vector<16x32xf32>
    %c0_1 = arith.constant 0 : index
    %c0_2 = arith.constant 0 : index
    %1 = vector.load %arg2[%c0_1, %c0_2] : memref<32x128xf32, #tpu.memory_space<vmem>>, vector<32x128xf32>
    %cst = arith.constant dense<0.000000e+00> : vector<16x128xf32>
    %2 = tpu.matmul %0, %1, %cst {dimension_numbers = #tpu.dot_dimension_numbers<[1], [0], [0], [1], [0, 0, 1, 1], [], []>} : vector<16x32xf32>, vector<32x128xf32>, vector<16x128xf32> -> vector<16x128xf32>
    %c0_3 = arith.constant 0 : index
    %c0_4 = arith.constant 0 : index
    %3 = vector.load %arg3[%c0_3, %c0_4] : memref<1x128xf32, #tpu.memory_space<vmem>>, vector<1x128xf32>
    %4 = vector.broadcast %3 : vector<1x128xf32> to vector<16x128xf32>
    %5 = arith.addf %2, %4 : vector<16x128xf32>
    %cst_5 = arith.constant 0.000000e+00 : f32
    %6 = vector.broadcast %cst_5 : f32 to vector<16x128xf32>
    %7 = arith.maximumf %5, %6 : vector<16x128xf32>
    %c0_6 = arith.constant 0 : index
    %c0_7 = arith.constant 0 : index
    %8 = vector.load %arg4[%c0_6, %c0_7] : memref<128x128xf32, #tpu.memory_space<vmem>>, vector<128x128xf32>
    %cst_8 = arith.constant dense<0.000000e+00> : vector<16x128xf32>
    %9 = tpu.matmul %7, %8, %cst_8 {dimension_numbers = #tpu.dot_dimension_numbers<[1], [0], [0], [1], [0, 0, 1, 1], [], []>} : vector<16x128xf32>, vector<128x128xf32>, vector<16x128xf32> -> vector<16x128xf32>
    %c0_9 = arith.constant 0 : index
    %c0_10 = arith.constant 0 : index
    %10 = vector.load %arg5[%c0_9, %c0_10] : memref<1x128xf32, #tpu.memory_space<vmem>>, vector<1x128xf32>
    %11 = vector.broadcast %10 : vector<1x128xf32> to vector<16x128xf32>
    %12 = arith.addf %9, %11 : vector<16x128xf32>
    %cst_11 = arith.constant 0.000000e+00 : f32
    %13 = vector.broadcast %cst_11 : f32 to vector<16x128xf32>
    %14 = arith.maximumf %12, %13 : vector<16x128xf32>
    %c0_12 = arith.constant 0 : index
    %c0_13 = arith.constant 0 : index
    %15 = vector.load %arg6[%c0_12, %c0_13] : memref<128x128xf32, #tpu.memory_space<vmem>>, vector<128x128xf32>
    %cst_14 = arith.constant dense<0.000000e+00> : vector<16x128xf32>
    %16 = tpu.matmul %14, %15, %cst_14 {dimension_numbers = #tpu.dot_dimension_numbers<[1], [0], [0], [1], [0, 0, 1, 1], [], []>} : vector<16x128xf32>, vector<128x128xf32>, vector<16x128xf32> -> vector<16x128xf32>
    %c0_15 = arith.constant 0 : index
    %c0_16 = arith.constant 0 : index
    %17 = vector.load %arg7[%c0_15, %c0_16] : memref<1x128xf32, #tpu.memory_space<vmem>>, vector<1x128xf32>
    %18 = vector.broadcast %17 : vector<1x128xf32> to vector<16x128xf32>
    %19 = arith.addf %16, %18 : vector<16x128xf32>
    %cst_17 = arith.constant 0.000000e+00 : f32
    %20 = vector.broadcast %cst_17 : f32 to vector<16x128xf32>
    %21 = arith.maximumf %19, %20 : vector<16x128xf32>
    %22 = tpu.iota {dimensions = array<i32: 0>} : vector<16x128xi32>
    %c16_i32 = arith.constant 16 : i32
    %23 = arith.muli %arg0, %c16_i32 : i32
    %24 = vector.broadcast %23 : i32 to vector<16x128xi32>
    %25 = arith.addi %22, %24 : vector<16x128xi32>
    %c8_i32 = arith.constant 8 : i32
    %26 = vector.broadcast %c8_i32 : i32 to vector<16x128xi32>
    %27 = arith.cmpi slt, %25, %26 : vector<16x128xi32>
    %cst_18 = arith.constant 0.000000e+00 : f32
    %28 = vector.broadcast %cst_18 : f32 to vector<16x128xf32>
    %29 = arith.select %27, %21, %28 : vector<16x128xi1>, vector<16x128xf32>
    %cst_19 = arith.constant dense<0.000000e+00> : vector<128xf32>
    %30 = vector.multi_reduction <add>, %29, %cst_19 [0] : vector<16x128xf32> to vector<128xf32>
    %31 = vector.shape_cast %30 : vector<128xf32> to vector<1x128xf32>
    %32 = arith.mulf %29, %29 : vector<16x128xf32>
    %cst_20 = arith.constant dense<0.000000e+00> : vector<128xf32>
    %33 = vector.multi_reduction <add>, %32, %cst_20 [0] : vector<16x128xf32> to vector<128xf32>
    %34 = vector.shape_cast %33 : vector<128xf32> to vector<1x128xf32>
    %35 = tpu.concatenate %31, %34 in 0 : vector<1x128xf32>, vector<1x128xf32> -> vector<2x128xf32>
    %36 = vector.shape_cast %35 : vector<2x128xf32> to vector<1x2x128xf32>
    %c0_21 = arith.constant 0 : index
    %c0_22 = arith.constant 0 : index
    %c0_23 = arith.constant 0 : index
    %37 = vector.load %arg8[%c0_21, %c0_22, %c0_23] : memref<1x2x128xf32, #tpu.memory_space<vmem>>, vector<1x2x128xf32>
    tpu.vector_store %arg8[%c0_21, %c0_22, %c0_23], %36 {strides = array<i32>} : memref<1x2x128xf32, #tpu.memory_space<vmem>>, vector<1x2x128xf32>,
    %c0_24 = arith.constant 0 : index
    %c0_25 = arith.constant 0 : index
    %38 = vector.load %arg9[%c0_24, %c0_25] : memref<16x128xf32, #tpu.memory_space<vmem>>, vector<16x128xf32>
    tpu.vector_store %arg9[%c0_24, %c0_25], %21 {strides = array<i32>} : memref<16x128xf32, #tpu.memory_space<vmem>>, vector<16x128xf32>,
    return
  }
  func.func @transform_0(%arg0: i32) -> (i32, i32) {
    %c0_i32 = arith.constant 0 : i32
    %c0_i32_0 = arith.constant 0 : i32
    return %arg0, %c0_i32 : i32, i32
  }
  func.func @transform_1(%arg0: i32) -> (i32, i32) {
    %c0_i32 = arith.constant 0 : i32
    %c0_i32_0 = arith.constant 0 : i32
    %c0_i32_1 = arith.constant 0 : i32
    return %c0_i32, %c0_i32_0 : i32, i32
  }
  func.func @transform_2(%arg0: i32) -> (i32, i32) {
    %c0_i32 = arith.constant 0 : i32
    %c0_i32_0 = arith.constant 0 : i32
    %c0_i32_1 = arith.constant 0 : i32
    return %c0_i32, %c0_i32_0 : i32, i32
  }
  func.func @transform_3(%arg0: i32) -> (i32, i32) {
    %c0_i32 = arith.constant 0 : i32
    %c0_i32_0 = arith.constant 0 : i32
    %c0_i32_1 = arith.constant 0 : i32
    return %c0_i32, %c0_i32_0 : i32, i32
  }
  func.func @transform_4(%arg0: i32) -> (i32, i32) {
    %c0_i32 = arith.constant 0 : i32
    %c0_i32_0 = arith.constant 0 : i32
    %c0_i32_1 = arith.constant 0 : i32
    return %c0_i32, %c0_i32_0 : i32, i32
  }
  func.func @transform_5(%arg0: i32) -> (i32, i32) {
    %c0_i32 = arith.constant 0 : i32
    %c0_i32_0 = arith.constant 0 : i32
    %c0_i32_1 = arith.constant 0 : i32
    return %c0_i32, %c0_i32_0 : i32, i32
  }
  func.func @transform_6(%arg0: i32) -> (i32, i32) {
    %c0_i32 = arith.constant 0 : i32
    %c0_i32_0 = arith.constant 0 : i32
    %c0_i32_1 = arith.constant 0 : i32
    return %c0_i32, %c0_i32_0 : i32, i32
  }
  func.func @transform_7(%arg0: i32) -> (i32, i32, i32) {
    %c0_i32 = arith.constant 0 : i32
    %c0_i32_0 = arith.constant 0 : i32
    %c0_i32_1 = arith.constant 0 : i32
    return %arg0, %c0_i32, %c0_i32_0 : i32, i32, i32
  }
  func.func @transform_8(%arg0: i32) -> (i32, i32) {
    %c0_i32 = arith.constant 0 : i32
    %c0_i32_0 = arith.constant 0 : i32
    return %arg0, %c0_i32 : i32, i32
  }
}

</mosaic_0001>

<bundles_post_ra>
// kernel: tpu_custom_call.1
= control target key start
LH: loop header
LB: loop body
LE: loop exit
PB: predicated region body
PF: predicated region fallthrough
CT: control target
= control target key end

     0   :  { %14 = vsyncpa [#allocation3], 0  ;;  %s574_s0 = inlined_call_operand.hbm [shape: f32[16,32], index: 0, kind: input, shape index: {}]   ;;  %s575_s1 = inlined_call_operand.hbm [shape: f32[32,128], index: 1, kind: input, shape index: {}]   ;;  %s576_s2 = inlined_call_operand.vmem [shape: f32[1,128], index: 2, kind: input, shape index: {}]   ;;  %s577_s3 = inlined_call_operand.hbm [shape: f32[128,128], index: 3, kind: input, shape index: {}]   ;;  %s578_s4 = inlined_call_operand.vmem [shape: f32[1,128], index: 4, kind: input, shape index: {}]   ;;  %s579_s5 = inlined_call_operand.hbm [shape: f32[128,128], index: 5, kind: input, shape index: {}]   ;;  %s580_s6 = inlined_call_operand.vmem [shape: f32[1,128], index: 6, kind: input, shape index: {}]   ;;  %s581_s7 = inlined_call_operand.hbm [shape: f32[1,2,128], index: 7, kind: output, shape index: {0}]   ;;  %s582_s8 = inlined_call_operand.hbm [shape: f32[16,128], index: 8, kind: output, shape index: {1}]  }
   0x1   :  { %15 = vsyncpa [#allocation6], 0 }
   0x2   :  { %16 = vsyncpa [#allocation9], 0 }
   0x3   :  { %17 = vsyncpa [#allocation4], 0 }
   0x4   :  { %18 = vsyncpa [#allocation12], 0  ;;  %s36_s29 = sshll.u32 %s575_s1, 4  ;;  %s477_s30 = smov [#allocation5]   ;;  %s37_s29 = int_to_ptr.hbm [resolvable:$true] %s36_s29 }
   0x5   :  { %s38_s9 = sshll.u32 %s477_s30, 4  ;;  %s23_s12 = sshll.u32 %s574_s0, 4  ;;  %s39_s9 = int_to_ptr.vmem [resolvable:$true] %s38_s9  ;;  %s24_s12 = int_to_ptr.hbm [resolvable:$true] %s23_s12 }
   0x6   :  { %s478_s13 = smov 128   ;;  %s479_s14 = smov 8  }
   0x7   :  { %44 = dma.hbm_to_vmem [thread:$0]  %s37_s29, 512, %s39_s9, [#allocation6], %s478_s13, %s478_s13, %s479_s14  }
   0x8   :  { %s480_s15 = smov [#allocation2]   ;;  %s51_s1 = sshll.u32 %s577_s3, 4  ;;  %s52_s1 = int_to_ptr.hbm [resolvable:$true] %s51_s1 }
   0x9   :  { %s25_s16 = sshll.u32 %s480_s15, 4  ;;  %s66_s20 = sshll.u32 %s579_s5, 4  ;;  %s26_s16 = int_to_ptr.vmem [resolvable:$true] %s25_s16  ;;  %s67_s20 = int_to_ptr.hbm [resolvable:$true] %s66_s20 }
   0xa   :  { %31 = dma.hbm_to_vmem [thread:$0]  %s24_s12, 256, %s26_s16, [#allocation3], %s478_s13, %s478_s13, %s479_s14  }
   0xb   :  { %s481_s21 = smov [#allocation7]   ;;  %s482_s23 = smov [#allocation8]  }
   0xc   :  { %s53_s22 = sshll.u32 %s481_s21, 4  ;;  %s68_s3 = sshll.u32 %s482_s23, 4  ;;  %s54_s22 = int_to_ptr.vmem [resolvable:$true] %s53_s22  ;;  %s69_s3 = int_to_ptr.vmem [resolvable:$true] %s68_s3 }
   0xd   :  { %59 = dma.hbm_to_vmem [thread:$0]  %s52_s1, 2048, %s54_s22, [#allocation6], %s478_s13, %s478_s13, %s479_s14  }
   0xe   :  { %74 = dma.hbm_to_vmem [thread:$0]  %s67_s20, 2048, %s69_s3, [#allocation9], %s478_s13, %s478_s13, %s479_s14  }
   0xf   :  { %467 = dma.done.wait [#allocation3], 256  }
  0x10   :  { %468 = vsyncadd [#allocation3], 4294967040 }
  0x11   :  { %469 = dma.done.wait [#allocation6], 2560  }
  0x12   :  { %470 = vsyncadd [#allocation6], 4294964736 }
  0x13   :  { %471 = dma.done.wait [#allocation9], 2048  }
  0x14   :  { %472 = vsyncadd [#allocation9], 4294965248  ;;  %v98_v0 = vld [vmem:[#allocation5 + $0x18] sm:$0xff]  ;;  %v97_v1 = vld [vmem:[#allocation5 + $0x10] sm:$0xff]  ;;  %vm103_vm0 = vcmask 261120   ;;  %s484_s9 = smov [#allocation10]  }
  0x15   :  { %122 = vmatpush.msra.mxu0 %v98_v0  ;;  %v96_v2 = vld [vmem:[#allocation5 + $0x8] sm:$0xff]  ;;  %v150_v3 = vld [vmem:[#allocation7 + $0x78] sm:$0xff]  ;;  %v149_v4 = vld [vmem:[#allocation7 + $0x70] sm:$0xff]  ;;  %s262_s10 = sshll.u32 %s484_s9, 4  ;;  %s264_s15 = sshll.u32 %s581_s7, 4  ;;  %vm252_vm1 = vcmask 1040384   ;;  %s263_s10 = int_to_ptr.vmem [resolvable:$true] %s262_s10  ;;  %s265_s15 = int_to_ptr.hbm [resolvable:$true] %s264_s15 }
  0x16   :  { %155 = vmatpush.msra.mxu1 %v150_v3  ;;  %v95_v5 = vld [vmem:[#allocation5] sm:$0xff]  ;;  %v148_v6 = vld [vmem:[#allocation7 + $0x68] sm:$0xff]  ;;  %296 = vmatpush.msra.mxu3 %v150_v3  ;;  %v93_v7 = vld [vmem:[#allocation2] sm:$0xff] }
  0x17   :  { %123 = vmatpush.msra.mxu0 %v97_v1  ;;  %v147_v8 = vld [vmem:[#allocation7 + $0x60] sm:$0xff]  ;;  %v146_v9 = vld [vmem:[#allocation7 + $0x58] sm:$0xff]  ;;  %v145_v10 = vld [vmem:[#allocation7 + $0x50] sm:$0xff] }
  0x18   :  { %156 = vmatpush.msra.mxu1 %v149_v4  ;;  %297 = vmatpush.msra.mxu3 %v149_v4  ;;  %v144_v11 = vld [vmem:[#allocation7 + $0x48] sm:$0xff]  ;;  %v94_v12 = vld [vmem:[#allocation2 + $0x8] sm:$0xff]  ;;  %v143_v13 = vld [vmem:[#allocation7 + $0x40] sm:$0xff] }
  0x19   :  { %124 = vmatpush.msra.mxu0 %v96_v2  ;;  %v142_v14 = vld [vmem:[#allocation7 + $0x38] sm:$0xff]  ;;  %v141_v15 = vld [vmem:[#allocation7 + $0x30] sm:$0xff]  ;;  %v140_v16 = vld [vmem:[#allocation7 + $0x28] sm:$0xff] }
  0x1a   :  { %157 = vmatpush.msra.mxu1 %v148_v6  ;;  %298 = vmatpush.msra.mxu3 %v148_v6  ;;  %v139_v17 = vld [vmem:[#allocation7 + $0x20] sm:$0xff]  ;;  %v138_v18 = vld [vmem:[#allocation7 + $0x18] sm:$0xff]  ;;  %v137_v19 = vld [vmem:[#allocation7 + $0x10] sm:$0xff] }
  0x1b   :  { %125 = vmatpush.msra.mxu0 %v95_v5  ;;  %v136_v20 = vld [vmem:[#allocation7 + $0x8] sm:$0xff]  ;;  %v135_v21 = vld [vmem:[#allocation7] sm:$0xff]  ;;  %v195_v22 = vld [vmem:[#allocation8 + $0x78] sm:$0xff] }
  0x1c   :  { %294 = vmatmul.msk.f32.vlgmr.msra.gmra.mxu0 %vm103_vm0, %v93_v7  ;;  %158 = vmatpush.msra.mxu1 %v147_v8  ;;  %v194_v23 = vld [vmem:[#allocation8 + $0x70] sm:$0xff]  ;;  %v193_v24 = vld [vmem:[#allocation8 + $0x68] sm:$0xff]  ;;  %v192_v25 = vld [vmem:[#allocation8 + $0x60] sm:$0xff] }
  0x1d   :  { %299 = vmatpush.msra.mxu3 %v147_v8  ;;  %200 = vmatpush.msra.mxu2 %v195_v22  ;;  %v191_v26 = vld [vmem:[#allocation8 + $0x58] sm:$0xff]  ;;  %v190_v27 = vld [vmem:[#allocation8 + $0x50] sm:$0xff]  ;;  %v189_v28 = vld [vmem:[#allocation8 + $0x48] sm:$0xff] }
  0x1e   :  { %159 = vmatpush.msra.mxu1 %v146_v9  ;;  %v188_v29 = vld [vmem:[#allocation8 + $0x40] sm:$0xff]  ;;  %v187_v30 = vld [vmem:[#allocation8 + $0x38] sm:$0xff]  ;;  %v320_v31 = vld [vmem:[%s576_s2] ss:$0 sm:$0xff] }
  0x1f   :  { %300 = vmatpush.msra.mxu3 %v146_v9  ;;  %201 = vmatpush.msra.mxu2 %v194_v23  ;;  %v186_v32 = vld [vmem:[#allocation8 + $0x30] sm:$0xff]  ;;  %v185_v33 = vld [vmem:[#allocation8 + $0x28] sm:$0xff]  ;;  %v184_v36 = vld [vmem:[#allocation8 + $0x20] sm:$0xff] }
  0x20   :  { %160 = vmatpush.msra.mxu1 %v145_v10  ;;  %v183_v38 = vld [vmem:[#allocation8 + $0x18] sm:$0xff]  ;;  %v182_v42 = vld [vmem:[#allocation8 + $0x10] sm:$0xff]  ;;  %v181_v43 = vld [vmem:[#allocation8 + $0x8] sm:$0xff] }
  0x21   :  { %301 = vmatpush.msra.mxu3 %v145_v10  ;;  %202 = vmatpush.msra.mxu2 %v193_v24  ;;  %v180_v44 = vld [vmem:[#allocation8] sm:$0xff]  ;;  %v321_v45 = vld [vmem:[%s578_s4] ss:$0 sm:$0xff]  ;;  %s483_s4 = smov [#allocation11]  }
  0x22   :  { %161 = vmatpush.msra.mxu1 %v144_v11  ;;  %v322_v52 = vld [vmem:[%s580_s6] ss:$0 sm:$0xff]  ;;  %s272_s28 = sshll.u32 %s483_s4, 4  ;;  %s274_s6 = sshll.u32 %s582_s8, 4  ;;  %s273_s28 = int_to_ptr.vmem [resolvable:$true] %s272_s28  ;;  %s275_s6 = int_to_ptr.hbm [resolvable:$true] %s274_s6 }
  0x23   :  { %302 = vmatpush.msra.mxu3 %v144_v11  ;;  %203 = vmatpush.msra.mxu2 %v192_v25 }
  0x24   :  { %295 = vmatmul.msk.f32.gmra.mxu0 %vm103_vm0, %v94_v12  ;;  %162 = vmatpush.msra.mxu1 %v143_v13 }
  0x25   :  { %303 = vmatpush.msra.mxu3 %v143_v13  ;;  %204 = vmatpush.msra.mxu2 %v191_v26 }
  0x26   :  { %163 = vmatpush.msra.mxu1 %v142_v14 }
  0x27   :  { %304 = vmatpush.msra.mxu3 %v142_v14  ;;  %205 = vmatpush.msra.mxu2 %v190_v27 }
  0x28   :  { %164 = vmatpush.msra.mxu1 %v141_v15 }
  0x29   :  { %305 = vmatpush.msra.mxu3 %v141_v15  ;;  %206 = vmatpush.msra.mxu2 %v189_v28 }
  0x2a   :  { %165 = vmatpush.msra.mxu1 %v140_v16 }
  0x2b   :  { %306 = vmatpush.msra.mxu3 %v140_v16  ;;  %207 = vmatpush.msra.mxu2 %v188_v29 }
  0x2c   :  { %166 = vmatpush.msra.mxu1 %v139_v17 }
  0x2d   :  { %307 = vmatpush.msra.mxu3 %v139_v17  ;;  %208 = vmatpush.msra.mxu2 %v187_v30 }
  0x2e   :  { %167 = vmatpush.msra.mxu1 %v138_v18 }
  0x2f   :  { %308 = vmatpush.msra.mxu3 %v138_v18  ;;  %209 = vmatpush.msra.mxu2 %v186_v32 }
  0x30   :  { %168 = vmatpush.msra.mxu1 %v137_v19 }
  0x31   :  { %309 = vmatpush.msra.mxu3 %v137_v19  ;;  %210 = vmatpush.msra.mxu2 %v185_v33 }
  0x32   :  { %169 = vmatpush.msra.mxu1 %v136_v20 }
  0x33   :  { %310 = vmatpush.msra.mxu3 %v136_v20  ;;  %211 = vmatpush.msra.mxu2 %v184_v36 }
  0x34   :  { %170 = vmatpush.msra.mxu1 %v135_v21 }
  0x35   :  { %311 = vmatpush.msra.mxu3 %v135_v21  ;;  %212 = vmatpush.msra.mxu2 %v183_v38 }
  0x37   :  { %213 = vmatpush.msra.mxu2 %v182_v42 }
  0x39   :  { %214 = vmatpush.msra.mxu2 %v181_v43 }
  0x3b   :  { %215 = vmatpush.msra.mxu2 %v180_v44 }
  0x99   :  { %v127_v34 = vpop.f32.mrf.mxu0 }
  0x9a   :  { %v128_v35 = vadd.f32 %v320_v31, %v127_v34 }
  0x9c   :  { %v133_v37 = vmax.f32 %v128_v35, 0.0 }
  0x9e   :  { %171 = vmatmul.f32.vlgmr.msra.gmra.mxu1 %v133_v37 }
  0xa1   :  { %v130_v39 = vpop.f32.mrf.mxu0 }
  0xa2   :  { %v131_v40 = vadd.f32 %v320_v31, %v130_v39 }
  0xa4   :  { %v134_v41 = vmax.f32 %v131_v40, 0.0 }
  0xa6   :  { %174 = vmatmul.f32.vlgmr.msra.gmra.mxu3 %v134_v41 }
 0x11b   :  { %v172_v46 = vpop.f32.mrf.mxu1 }
 0x11c   :  { %v173_v47 = vadd.f32 %v321_v45, %v172_v46 }
 0x11e   :  { %v178_v48 = vmax.f32 %v173_v47, 0.0 }
 0x120   :  { %216 = vmatmul.f32.vlgmr.msra.gmra.mxu2 %v178_v48 }
 0x129   :  { %v175_v49 = vpop.f32.mrf.mxu3 }
 0x12a   :  { %v176_v50 = vadd.f32 %v321_v45, %v175_v49 }
 0x12c   :  { %v179_v51 = vmax.f32 %v176_v50, 0.0 }
 0x12e   :  { %219 = vmatmul.f32.gmra.mxu2 %v179_v51 }
 0x1a3   :  { %v217_v53 = vpop.f32.mrf.mxu2 }
 0x1a4   :  { %v218_v54 = vadd.f32 %v322_v52, %v217_v53 }
 0x1a6   :  { %v223_v55 = vmax.f32 %v218_v54, 0.0 }
 0x1a8   :  { %v237_v56 = vrot.slane %v223_v55, 4  ;;  %v243_v57 = vmul.f32 %v223_v55, %v223_v55  ;;  %255 = vst [vmem:[#allocation11] sm:$0xff] %v223_v55 }
 0x1aa   :  { %v238_v58 = vadd.f32 %v237_v56, %v223_v55  ;;  %v246_v59 = vrot.slane %v243_v57, 4 }
 0x1ac   :  { %v239_v60 = vrot.slane %v238_v58, 2  ;;  %v247_v61 = vadd.f32 %v246_v59, %v243_v57 }
 0x1ae   :  { %v240_v62 = vadd.f32 %v239_v60, %v238_v58  ;;  %v248_v63 = vrot.slane %v247_v61, 2 }
 0x1b0   :  { %v241_v0 = vrot.slane %v240_v62, 1  ;;  %v249_v1 = vadd.f32 %v248_v63, %v247_v61 }
 0x1b1   :  { %v220_v2 = vpop.f32.mrf.mxu2 }
 0x1b2   :  { %v221_v3 = vadd.f32 %v322_v52, %v220_v2  ;;  %v250_v4 = vrot.slane %v249_v1, 1  ;;  %v242_v6 = vadd.f32 %v241_v0, %v240_v62 }
 0x1b4   :  { %v224_v5 = vmax.f32 %v221_v3, 0.0  ;;  %v251_v7 = vadd.f32 %v250_v4, %v249_v1 }
 0x1b6   :  { %256 = vst [vmem:[#allocation11 + $0x8] sm:$0xff] %v224_v5  ;;  %v253_v8 = vsel %vm252_vm1, %v242_v6, %v251_v7 }
 0x1b7   :  { %254 = vst [vmem:[#allocation10] sm:$0x3] %v253_v8  ;;  %280 = dma.vmem_to_hbm [thread:$0]  %s273_s28, 256, %s275_s6, [#allocation12], %s478_s13, %s478_s13, %s479_s14  }
 0x1b8   :  { %267 = dma.vmem_to_hbm [thread:$0]  %s263_s10, 32, %s265_s15, [#allocation4]  }
 0x1b9   :  { %473 = dma.done.wait [#allocation4], 32  }
 0x1ba   :  { %474 = vsyncadd [#allocation4], 4294967264 }
 0x1bb   :  { %475 = dma.done.wait [#allocation12], 256  }
 0x1bc   :  { %476 = vsyncadd [#allocation12], 4294967040 }
 0x1bd   :  { %289 = vsyncpa [#allocation3], 1 }
 0x1be   :  { %290 = vsyncpa [#allocation6], 1 }
 0x1bf   :  { %291 = vsyncpa [#allocation9], 1 }
 0x1c0   :  { %292 = vsyncpa [#allocation4], 1 }
 0x1c1   :  { %293 = vsyncpa [#allocation12], 1 }

</bundles_post_ra>
